<compile_context>
chip_gen: v5e
topology: v5e:2x2
jax: 0.10.0
libtpu: 0.0.40
codegen_flags: <defaults>
</compile_context>

<pallas_src>
import functools

import jax
import jax.numpy as jnp
from jax.experimental import pallas as pl
from jax.experimental.pallas import tpu as pltpu

NEG_SLOPE = 0.01  # F.leaky_relu default negative slope
LANE = 128        # TPU lane width
SUBLANE = 8       # f32 sublane width


def _round_up(n, m):
    return ((n + m - 1) // m) * m


def _leaky_relu(x):
    return jnp.where(x > 0, x, NEG_SLOPE * x)


# --------------------------------------------------------------------------
# Kernel: h1 = lrelu(x@W1+b1); h2 = lrelu(h1@Wh+bh); Q = h2@Wq+bq
# (dueling combine is pre-folded into Wq/bq in the wrapper)
# --------------------------------------------------------------------------
def dueling_dqn_kernel(x_ref, w1_ref, b1_ref, wh_ref, bh_ref,
                       wq_ref, bq_ref, out_ref):
    h1 = _leaky_relu(
        jnp.dot(x_ref[...], w1_ref[...], preferred_element_type=jnp.float32)
        + b1_ref[...])
    h2 = _leaky_relu(
        jnp.dot(h1.astype(wh_ref.dtype), wh_ref[...],
                preferred_element_type=jnp.float32)
        + bh_ref[...])
    q = (jnp.dot(h2.astype(wq_ref.dtype), wq_ref[...],
                 preferred_element_type=jnp.float32)
         + bq_ref[...])
    # Lanes 0..A-1 hold Q; lanes >= A are don't-care (sliced off in wrapper).
    out_ref[...] = q.astype(out_ref.dtype)


# --------------------------------------------------------------------------
# Wrapper-side parameter preparation (padding + dueling fold, done once)
# --------------------------------------------------------------------------
def prepare_params(params, compute_dtype=jnp.bfloat16):
    """Pad lane dims to 128, fold the dueling combine into the head weights."""
    w1, b1, wh, bh, wv, bv, wa, ba = params
    state_size, hidden_size = w1.shape
    action_size = wa.shape[1]

    h_pad = _round_up(hidden_size, LANE)
    o_pad = _round_up(action_size, LANE)

    def pad2(m, rows, cols):
        return jnp.pad(m, ((0, rows - m.shape[0]), (0, cols - m.shape[1])))

    # W1 keeps its real row count (x is streamed unpadded in the state dim);
    # only the hidden (lane) dim is padded.  Padded W/bias entries are zero,
    # so padded hidden lanes stay exactly zero through both leaky_relus.
    w1p = pad2(w1, state_size, h_pad).astype(compute_dtype)
    b1p = pad2(b1, 1, h_pad).astype(jnp.float32)
    whp = pad2(wh, h_pad, h_pad).astype(compute_dtype)
    bhp = pad2(bh, 1, h_pad).astype(jnp.float32)

    # Fold the dueling combine (V + A - mean(A)) into a single head, in f32:
    #   W_q[:, j] = wa[:, j] + wv[:, 0] - mean_k(wa[:, k])
    #   b_q[0, j] = ba[0, j] + bv[0, 0] - mean_k(ba[0, k])
    wq = wa + wv - jnp.mean(wa, axis=1, keepdims=True)      # (H, A)
    bq = ba + bv - jnp.mean(ba, axis=1, keepdims=True)      # (1, A)
    wqp = pad2(wq, h_pad, o_pad).astype(compute_dtype)
    bqp = pad2(bq, 1, o_pad).astype(jnp.float32)

    meta = dict(state_size=state_size, hidden_size=hidden_size,
                action_size=action_size, h_pad=h_pad, o_pad=o_pad,
                compute_dtype=compute_dtype)
    return (w1p, b1p, whp, bhp, wqp, bqp), meta


# --------------------------------------------------------------------------
# Forward
# --------------------------------------------------------------------------
def dueling_dqn_forward(x, padded_params, meta, block_batch=1024):
    w1p, b1p, whp, bhp, wqp, bqp = padded_params
    state_size = meta["state_size"]
    h_pad, o_pad = meta["h_pad"], meta["o_pad"]
    action_size = meta["action_size"]
    compute_dtype = meta["compute_dtype"]

    batch = x.shape[0]
    block_batch = max(SUBLANE, _round_up(block_batch, SUBLANE))

    # Batch tile: large (overhead-amortizing) but no bigger than the batch.
    b_ceil = _round_up(batch, SUBLANE)
    tb = min(block_batch, b_ceil)
    # v7x dual-TC: make sure the "parallel" batch axis has >= 2 grid steps
    # whenever the batch is big enough to split.
    if b_ceil // tb < 2 and b_ceil >= 2 * SUBLANE:
        tb = _round_up((b_ceil + 1) // 2, SUBLANE)
    b_pad = _round_up(batch, tb)

    # Stream x unpadded in the state dim (block = full minor dim); only the
    # batch dim is padded to a tile multiple.  Cast to bf16 for the MXU.
    x_pad = jnp.pad(x, ((0, b_pad - batch), (0, 0))).astype(compute_dtype)

    out = pl.pallas_call(
        dueling_dqn_kernel,
        out_shape=jax.ShapeDtypeStruct((b_pad, o_pad), compute_dtype),
        grid=(b_pad // tb,),
        in_specs=[
            pl.BlockSpec((tb, state_size), lambda i: (i, 0)),    # x: streamed
            pl.BlockSpec((state_size, h_pad), lambda i: (0, 0)),  # W1: resident
            pl.BlockSpec((1, h_pad), lambda i: (0, 0)),          # b1
            pl.BlockSpec((h_pad, h_pad), lambda i: (0, 0)),      # Wh
            pl.BlockSpec((1, h_pad), lambda i: (0, 0)),          # bh
            pl.BlockSpec((h_pad, o_pad), lambda i: (0, 0)),      # Wq (folded)
            pl.BlockSpec((1, o_pad), lambda i: (0, 0)),          # bq (folded)
        ],
        out_specs=pl.BlockSpec((tb, o_pad), lambda i: (i, 0)),   # lane-dense
        compiler_params=pltpu.CompilerParams(
            dimension_semantics=("parallel",)),                  # megacore
    )(x_pad, w1p, b1p, whp, bhp, wqp, bqp)

    # Real Q values live in lanes 0..A-1; upcast bf16 -> f32 for callers.
    return out[:batch, :action_size].astype(jnp.float32)


# --------------------------------------------------------------------------
# Init + pure-JAX reference
# --------------------------------------------------------------------------
def init_params(key, state_size, action_size, hidden_size):
    """Deterministic init mimicking nn.Linear's U(-1/sqrt(fan_in), +1/sqrt(fan_in))."""
    def linear(k, fan_in, fan_out):
        kw, kb = jax.random.split(k)
        bound = 1.0 / jnp.sqrt(jnp.float32(fan_in))
        w = jax.random.uniform(kw, (fan_in, fan_out), jnp.float32, -bound, bound)
        b = jax.random.uniform(kb, (1, fan_out), jnp.float32, -bound, bound)
        return w, b

    k1, k2, k3, k4 = jax.random.split(key, 4)
    w1, b1 = linear(k1, state_size, hidden_size)
    wh, bh = linear(k2, hidden_size, hidden_size)
    wv, bv = linear(k3, hidden_size, 1)
    wa, ba = linear(k4, hidden_size, action_size)
    return (w1, b1, wh, bh, wv, bv, wa, ba)


def reference_forward(x, params):
    """Pure-JAX f32 reference matching the PyTorch module exactly."""
    w1, b1, wh, bh, wv, bv, wa, ba = params
    h1 = _leaky_relu(x @ w1 + b1)
    h2 = _leaky_relu(h1 @ wh + bh)
    v = h2 @ wv + bv
    a = h2 @ wa + ba
    return v + a - jnp.mean(a, axis=1, keepdims=True)


if __name__ == "__main__":
    batch = 2
    state_size = 16
    action_size = 4
    hidden_size = 32

    key = jax.random.PRNGKey(0)
    kx, kp = jax.random.split(key)
    x = jax.random.normal(kx, (batch, state_size), jnp.float32)
    params = init_params(kp, state_size, action_size, hidden_size)

    padded_params, meta = prepare_params(params, compute_dtype=jnp.bfloat16)

    q = dueling_dqn_forward(x, padded_params, meta)
    q = jax.block_until_ready(q)

    q_ref = reference_forward(x, params)
    assert q.shape == (batch, action_size), q.shape
    # bf16 MXU operands + bf16 output store => loosened tolerance vs f32 ref.
    assert jnp.allclose(q, q_ref, atol=5e-2, rtol=5e-2), (
        f"mismatch vs reference: max abs diff {jnp.max(jnp.abs(q - q_ref))}")

    print("KERNEL_OK")
</pallas_src>

<mosaic_0001>
module attributes {stable_mosaic.version = 11 : i64} {
  func.func @dueling_dqn_kernel(%arg0: i32, %arg1: memref<8x16xbf16, #tpu.memory_space<vmem>>, %arg2: memref<16x128xbf16, #tpu.memory_space<vmem>>, %arg3: memref<1x128xf32, #tpu.memory_space<vmem>>, %arg4: memref<128x128xbf16, #tpu.memory_space<vmem>>, %arg5: memref<1x128xf32, #tpu.memory_space<vmem>>, %arg6: memref<128x128xbf16, #tpu.memory_space<vmem>>, %arg7: memref<1x128xf32, #tpu.memory_space<vmem>>, %arg8: memref<8x128xbf16, #tpu.memory_space<vmem>>) attributes {dimension_semantics = [#tpu.dimension_semantics<parallel>], iteration_bounds = array<i64: 1>, scalar_prefetch = 0 : i64, scratch_operands = 0 : i64, tpu.core_type = #tpu.core_type<tc>, window_params = [{transform_indices = @transform_0, window_bounds = array<i64: 8, 16>}, {pipeline_mode = #tpu.pipeline_mode<synchronous>, transform_indices = @transform_1, window_bounds = array<i64: 16, 128>}, {pipeline_mode = #tpu.pipeline_mode<synchronous>, transform_indices = @transform_2, window_bounds = array<i64: 1, 128>}, {pipeline_mode = #tpu.pipeline_mode<synchronous>, transform_indices = @transform_3, window_bounds = array<i64: 128, 128>}, {pipeline_mode = #tpu.pipeline_mode<synchronous>, transform_indices = @transform_4, window_bounds = array<i64: 1, 128>}, {pipeline_mode = #tpu.pipeline_mode<synchronous>, transform_indices = @transform_5, window_bounds = array<i64: 128, 128>}, {pipeline_mode = #tpu.pipeline_mode<synchronous>, transform_indices = @transform_6, window_bounds = array<i64: 1, 128>}, {transform_indices = @transform_7, window_bounds = array<i64: 8, 128>}]} {
    %c0 = arith.constant 0 : index
    %c0_0 = arith.constant 0 : index
    %0 = vector.load %arg1[%c0, %c0_0] : memref<8x16xbf16, #tpu.memory_space<vmem>>, vector<8x16xbf16>
    %c0_1 = arith.constant 0 : index
    %c0_2 = arith.constant 0 : index
    %1 = vector.load %arg2[%c0_1, %c0_2] : memref<16x128xbf16, #tpu.memory_space<vmem>>, vector<16x128xbf16>
    %cst = arith.constant dense<0.000000e+00> : vector<8x128xf32>
    %2 = tpu.matmul %0, %1, %cst {dimension_numbers = #tpu.dot_dimension_numbers<[1], [0], [0], [1], [0, 0, 1, 1], [], []>} : vector<8x16xbf16>, vector<16x128xbf16>, vector<8x128xf32> -> vector<8x128xf32>
    %c0_3 = arith.constant 0 : index
    %c0_4 = arith.constant 0 : index
    %3 = vector.load %arg3[%c0_3, %c0_4] : memref<1x128xf32, #tpu.memory_space<vmem>>, vector<1x128xf32>
    %4 = vector.broadcast %3 : vector<1x128xf32> to vector<8x128xf32>
    %5 = arith.addf %2, %4 : vector<8x128xf32>
    %cst_5 = arith.constant 0.000000e+00 : f32
    %6 = vector.broadcast %cst_5 : f32 to vector<8x128xf32>
    %7 = arith.cmpf ogt, %5, %6 : vector<8x128xf32>
    %cst_6 = arith.constant 0.00999999977 : f32
    %8 = vector.broadcast %cst_6 : f32 to vector<8x128xf32>
    %9 = arith.mulf %8, %5 : vector<8x128xf32>
    %10 = arith.select %7, %5, %9 : vector<8x128xi1>, vector<8x128xf32>
    %11 = arith.truncf %10 : vector<8x128xf32> to vector<8x128xbf16>
    %c0_7 = arith.constant 0 : index
    %c0_8 = arith.constant 0 : index
    %12 = vector.load %arg4[%c0_7, %c0_8] : memref<128x128xbf16, #tpu.memory_space<vmem>>, vector<128x128xbf16>
    %cst_9 = arith.constant dense<0.000000e+00> : vector<8x128xf32>
    %13 = tpu.matmul %11, %12, %cst_9 {dimension_numbers = #tpu.dot_dimension_numbers<[1], [0], [0], [1], [0, 0, 1, 1], [], []>} : vector<8x128xbf16>, vector<128x128xbf16>, vector<8x128xf32> -> vector<8x128xf32>
    %c0_10 = arith.constant 0 : index
    %c0_11 = arith.constant 0 : index
    %14 = vector.load %arg5[%c0_10, %c0_11] : memref<1x128xf32, #tpu.memory_space<vmem>>, vector<1x128xf32>
    %15 = vector.broadcast %14 : vector<1x128xf32> to vector<8x128xf32>
    %16 = arith.addf %13, %15 : vector<8x128xf32>
    %cst_12 = arith.constant 0.000000e+00 : f32
    %17 = vector.broadcast %cst_12 : f32 to vector<8x128xf32>
    %18 = arith.cmpf ogt, %16, %17 : vector<8x128xf32>
    %cst_13 = arith.constant 0.00999999977 : f32
    %19 = vector.broadcast %cst_13 : f32 to vector<8x128xf32>
    %20 = arith.mulf %19, %16 : vector<8x128xf32>
    %21 = arith.select %18, %16, %20 : vector<8x128xi1>, vector<8x128xf32>
    %22 = arith.truncf %21 : vector<8x128xf32> to vector<8x128xbf16>
    %c0_14 = arith.constant 0 : index
    %c0_15 = arith.constant 0 : index
    %23 = vector.load %arg6[%c0_14, %c0_15] : memref<128x128xbf16, #tpu.memory_space<vmem>>, vector<128x128xbf16>
    %cst_16 = arith.constant dense<0.000000e+00> : vector<8x128xf32>
    %24 = tpu.matmul %22, %23, %cst_16 {dimension_numbers = #tpu.dot_dimension_numbers<[1], [0], [0], [1], [0, 0, 1, 1], [], []>} : vector<8x128xbf16>, vector<128x128xbf16>, vector<8x128xf32> -> vector<8x128xf32>
    %c0_17 = arith.constant 0 : index
    %c0_18 = arith.constant 0 : index
    %25 = vector.load %arg7[%c0_17, %c0_18] : memref<1x128xf32, #tpu.memory_space<vmem>>, vector<1x128xf32>
    %26 = vector.broadcast %25 : vector<1x128xf32> to vector<8x128xf32>
    %27 = arith.addf %24, %26 : vector<8x128xf32>
    %28 = arith.truncf %27 : vector<8x128xf32> to vector<8x128xbf16>
    %c0_19 = arith.constant 0 : index
    %c0_20 = arith.constant 0 : index
    %29 = vector.load %arg8[%c0_19, %c0_20] : memref<8x128xbf16, #tpu.memory_space<vmem>>, vector<8x128xbf16>
    tpu.vector_store %arg8[%c0_19, %c0_20], %28 {strides = array<i32>} : memref<8x128xbf16, #tpu.memory_space<vmem>>, vector<8x128xbf16>,
    return
  }
  func.func @transform_0(%arg0: i32) -> (i32, i32) {
    %c0_i32 = arith.constant 0 : i32
    %c0_i32_0 = arith.constant 0 : i32
    return %arg0, %c0_i32 : i32, i32
  }
  func.func @transform_1(%arg0: i32) -> (i32, i32) {
    %c0_i32 = arith.constant 0 : i32
    %c0_i32_0 = arith.constant 0 : i32
    %c0_i32_1 = arith.constant 0 : i32
    return %c0_i32, %c0_i32_0 : i32, i32
  }
  func.func @transform_2(%arg0: i32) -> (i32, i32) {
    %c0_i32 = arith.constant 0 : i32
    %c0_i32_0 = arith.constant 0 : i32
    %c0_i32_1 = arith.constant 0 : i32
    return %c0_i32, %c0_i32_0 : i32, i32
  }
  func.func @transform_3(%arg0: i32) -> (i32, i32) {
    %c0_i32 = arith.constant 0 : i32
    %c0_i32_0 = arith.constant 0 : i32
    %c0_i32_1 = arith.constant 0 : i32
    return %c0_i32, %c0_i32_0 : i32, i32
  }
  func.func @transform_4(%arg0: i32) -> (i32, i32) {
    %c0_i32 = arith.constant 0 : i32
    %c0_i32_0 = arith.constant 0 : i32
    %c0_i32_1 = arith.constant 0 : i32
    return %c0_i32, %c0_i32_0 : i32, i32
  }
  func.func @transform_5(%arg0: i32) -> (i32, i32) {
    %c0_i32 = arith.constant 0 : i32
    %c0_i32_0 = arith.constant 0 : i32
    %c0_i32_1 = arith.constant 0 : i32
    return %c0_i32, %c0_i32_0 : i32, i32
  }
  func.func @transform_6(%arg0: i32) -> (i32, i32) {
    %c0_i32 = arith.constant 0 : i32
    %c0_i32_0 = arith.constant 0 : i32
    %c0_i32_1 = arith.constant 0 : i32
    return %c0_i32, %c0_i32_0 : i32, i32
  }
  func.func @transform_7(%arg0: i32) -> (i32, i32) {
    %c0_i32 = arith.constant 0 : i32
    %c0_i32_0 = arith.constant 0 : i32
    return %arg0, %c0_i32 : i32, i32
  }
}

</mosaic_0001>

<bundles_post_ra>
// kernel: tpu_custom_call.1
= control target key start
LH: loop header
LB: loop body
LE: loop exit
PB: predicated region body
PF: predicated region fallthrough
CT: control target
= control target key end

     0   :  { %12 = vsyncpa [#allocation3], 0  ;;  %s605_s0 = inlined_call_operand.hbm [shape: bf16[8,16], index: 0, kind: input, shape index: {}]   ;;  %s606_s1 = inlined_call_operand.hbm [shape: bf16[16,128], index: 1, kind: input, shape index: {}]   ;;  %s607_s2 = inlined_call_operand.vmem [shape: f32[1,128], index: 2, kind: input, shape index: {}]   ;;  %s608_s3 = inlined_call_operand.hbm [shape: bf16[128,128], index: 3, kind: input, shape index: {}]   ;;  %s609_s4 = inlined_call_operand.vmem [shape: f32[1,128], index: 4, kind: input, shape index: {}]   ;;  %s610_s5 = inlined_call_operand.hbm [shape: bf16[128,128], index: 5, kind: input, shape index: {}]   ;;  %s611_s6 = inlined_call_operand.vmem [shape: f32[1,128], index: 6, kind: input, shape index: {}]   ;;  %s612_s7 = inlined_call_operand.hbm [shape: bf16[8,128], index: 7, kind: output, shape index: {}]  }
   0x1   :  { %13 = vsyncpa [#allocation6], 0 }
   0x2   :  { %14 = vsyncpa [#allocation9], 0  ;;  %s31_s26 = sshll.u32 %s606_s1, 4  ;;  %s32_s26 = int_to_ptr.hbm [resolvable:$true] %s31_s26 }
   0x3   :  { %15 = vsyncpa [#allocation4], 0  ;;  %s534_s27 = smov [#allocation5]   ;;  %s21_s8 = sshll.u32 %s605_s0, 4  ;;  %s22_s8 = int_to_ptr.hbm [resolvable:$true] %s21_s8 }
   0x4   :  { %s33_s28 = sshll.u32 %s534_s27, 4  ;;  %s535_s9 = smov 64   ;;  %s34_s28 = int_to_ptr.vmem [resolvable:$true] %s33_s28 }
   0x5   :  { %s536_s10 = smov 4   ;;  %s537_s11 = smov [#allocation2]  }
   0x6   :  { %39 = dma.hbm_to_vmem [thread:$0]  %s32_s26, 128, %s34_s28, [#allocation6], %s535_s9, %s535_s9, %s536_s10  }
   0x7   :  { %s23_s12 = sshll.u32 %s537_s11, 4  ;;  %s46_s15 = sshll.u32 %s608_s3, 4  ;;  %s24_s12 = int_to_ptr.vmem [resolvable:$true] %s23_s12  ;;  %s47_s15 = int_to_ptr.hbm [resolvable:$true] %s46_s15 }
   0x8   :  { %26 = dma.hbm_to_vmem [thread:$0]  %s22_s8, 64, %s24_s12, [#allocation3]  }
   0x9   :  { %s61_s17 = sshll.u32 %s610_s5, 4  ;;  %s538_s18 = smov [#allocation7]   ;;  %s62_s17 = int_to_ptr.hbm [resolvable:$true] %s61_s17 }
   0xa   :  { %s48_s19 = sshll.u32 %s538_s18, 4  ;;  %s539_s0 = smov [#allocation8]   ;;  %s49_s19 = int_to_ptr.vmem [resolvable:$true] %s48_s19 }
   0xb   :  { %54 = dma.hbm_to_vmem [thread:$0]  %s47_s15, 1024, %s49_s19, [#allocation6], %s535_s9, %s535_s9, %s536_s10  }
   0xc   :  { %s63_s20 = sshll.u32 %s539_s0, 4  ;;  %s64_s20 = int_to_ptr.vmem [resolvable:$true] %s63_s20 }
   0xd   :  { %69 = dma.hbm_to_vmem [thread:$0]  %s62_s17, 1024, %s64_s20, [#allocation9], %s535_s9, %s535_s9, %s536_s10  }
   0xe   :  { %526 = dma.done.wait [#allocation3], 64  }
   0xf   :  { %527 = vsyncadd [#allocation3], 4294967232 }
  0x10   :  { %528 = dma.done.wait [#allocation6], 1152  }
  0x11   :  { %529 = vsyncadd [#allocation6], 4294966144 }
  0x12   :  { %530 = dma.done.wait [#allocation9], 1024  }
  0x13   :  { %531 = vsyncadd [#allocation9], 4294966272  ;;  %v379_v0 = vld [vmem:[#allocation5] sm:$0xff]  ;;  %v89_v2 = vld [vmem:[#allocation2] sm:$0xf]  ;;  %vm102_vm0 = vcmask 130048  }
  0x14   :  { %v387_v1 = vld [vmem:[#allocation7 + $0x38] sm:$0xff]  ;;  %113 = vmatpush.bf16.msra.mxu0 %v379_v0  ;;  %v386_v3 = vld [vmem:[#allocation7 + $0x30] sm:$0xff]  ;;  %v385_v4 = vld [vmem:[#allocation7 + $0x28] sm:$0xff]  ;;  %s540_s24 = smov [#allocation10]   ;;  %s298_s28 = sshll.u32 %s612_s7, 4  ;;  %s299_s28 = int_to_ptr.hbm [resolvable:$true] %s298_s28 }
  0x15   :  { %191 = vmatpush.bf16.msra.mxu1 %v387_v1  ;;  %v384_v5 = vld [vmem:[#allocation7 + $0x20] sm:$0xff]  ;;  %v383_v6 = vld [vmem:[#allocation7 + $0x18] sm:$0xff]  ;;  %v382_v7 = vld [vmem:[#allocation7 + $0x10] sm:$0xff]  ;;  %s296_s25 = sshll.u32 %s540_s24, 4  ;;  %s297_s25 = int_to_ptr.vmem [resolvable:$true] %s296_s25 }
  0x16   :  { %v381_v8 = vld [vmem:[#allocation7 + $0x8] sm:$0xff]  ;;  %v380_v9 = vld [vmem:[#allocation7] sm:$0xff]  ;;  %v395_v10 = vld [vmem:[#allocation8 + $0x38] sm:$0xff] }
  0x17   :  { %314 = vmatmul.msk.bf16.vlgmr.msra.gmra.mxu0 %vm102_vm0, %v89_v2  ;;  %276 = vmatpush.bf16.msra.mxu2 %v395_v10  ;;  %v394_v11 = vld [vmem:[#allocation8 + $0x30] sm:$0xff]  ;;  %v393_v12 = vld [vmem:[#allocation8 + $0x28] sm:$0xff]  ;;  %v392_v13 = vld [vmem:[#allocation8 + $0x20] sm:$0xff] }
  0x18   :  { %v391_v14 = vld [vmem:[#allocation8 + $0x18] sm:$0xff]  ;;  %v390_v15 = vld [vmem:[#allocation8 + $0x10] sm:$0xff]  ;;  %v389_v23 = vld [vmem:[#allocation8 + $0x8] sm:$0xff] }
  0x19   :  { %192 = vmatpush.bf16.msra.mxu1 %v386_v3  ;;  %v403_v16 = vld [vmem:[%s607_s2] ss:$0 sm:$0xff]  ;;  %v388_v24 = vld [vmem:[#allocation8] sm:$0xff] }
  0x1a   :  { %v404_v25 = vld [vmem:[%s609_s4] ss:$0 sm:$0xff] }
  0x1b   :  { %277 = vmatpush.bf16.msra.mxu2 %v394_v11  ;;  %v405_v32 = vld [vmem:[%s611_s6] ss:$0 sm:$0xff] }
  0x1d   :  { %193 = vmatpush.bf16.msra.mxu1 %v385_v4 }
  0x1f   :  { %278 = vmatpush.bf16.msra.mxu2 %v393_v12 }
  0x21   :  { %194 = vmatpush.bf16.msra.mxu1 %v384_v5 }
  0x23   :  { %279 = vmatpush.bf16.msra.mxu2 %v392_v13 }
  0x25   :  { %195 = vmatpush.bf16.msra.mxu1 %v383_v6 }
  0x27   :  { %280 = vmatpush.bf16.msra.mxu2 %v391_v14 }
  0x29   :  { %196 = vmatpush.bf16.msra.mxu1 %v382_v7 }
  0x2b   :  { %281 = vmatpush.bf16.msra.mxu2 %v390_v15 }
  0x2d   :  { %197 = vmatpush.bf16.msra.mxu1 %v381_v8 }
  0x2f   :  { %282 = vmatpush.bf16.msra.mxu2 %v389_v23 }
  0x31   :  { %198 = vmatpush.bf16.msra.mxu1 %v380_v9 }
  0x33   :  { %283 = vmatpush.bf16.msra.mxu2 %v388_v24 }
  0x94   :  { %v115_v17 = vpop.f32.mrf.mxu0 }
  0x95   :  { %v116_v18 = vadd.f32 %v403_v16, %v115_v17 }
  0x97   :  { %v120_v19 = vmul.f32 0.01, %v116_v18  ;;  %vm119_vm1 = vcmp.gt.f32.partialorder %v116_v18, 0.0 }
  0x99   :  { %v121_v20 = vsel %vm119_vm1, %v116_v18, %v120_v19 }
  0x9a   :  { %v122_v21 = vpack.c.bf16 %v121_v20, %v121_v20 }
  0x9c   :  { %v117_v22 = vpop.f32.mrf.mxu0  ;;  %199 = vmatmul.bf16.vlgmr.msra.gmra.mxu1 %v122_v21 }
 0x119   :  { %v200_v26 = vpop.f32.mrf.mxu1 }
 0x11a   :  { %v201_v27 = vadd.f32 %v404_v25, %v200_v26 }
 0x11c   :  { %v205_v28 = vmul.f32 0.01, %v201_v27  ;;  %vm204_vm2 = vcmp.gt.f32.partialorder %v201_v27, 0.0 }
 0x11e   :  { %v206_v29 = vsel %vm204_vm2, %v201_v27, %v205_v28 }
 0x11f   :  { %v207_v30 = vpack.c.bf16 %v206_v29, %v206_v29 }
 0x121   :  { %v202_v31 = vpop.f32.mrf.mxu1  ;;  %284 = vmatmul.bf16.vlgmr.msra.gmra.mxu2 %v207_v30 }
 0x1a4   :  { %v285_v33 = vpop.f32.mrf.mxu2 }
 0x1a5   :  { %v286_v34 = vadd.f32 %v405_v32, %v285_v33 }
 0x1a7   :  { %v289_v35 = vpack.c.bf16 %v286_v34, %v286_v34 }
 0x1a9   :  { %290 = vst [vmem:[#allocation10] sm:$0xf] %v289_v35 }
 0x1aa   :  { %301 = dma.vmem_to_hbm [thread:$0]  %s297_s25, 64, %s299_s28, [#allocation4]  }
 0x1ac   :  { %v287_v36 = vpop.f32.mrf.mxu2 }
 0x1ad   :  { %532 = dma.done.wait [#allocation4], 64  }
 0x1ae   :  { %533 = vsyncadd [#allocation4], 4294967232 }
 0x1af   :  { %306 = vsyncpa [#allocation3], 1 }
 0x1b0   :  { %307 = vsyncpa [#allocation6], 1 }
 0x1b1   :  { %308 = vsyncpa [#allocation9], 1 }
 0x1b2   :  { %309 = vsyncpa [#allocation4], 1 }

</bundles_post_ra>
